<compile_context>
chip_gen: v5e
topology: v5e:2x2
jax: 0.10.0
libtpu: 0.0.40
codegen_flags: <defaults>
</compile_context>

<pallas_src>
import functools

import jax
import jax.numpy as jnp
from jax.experimental import pallas as pl
from jax.experimental.pallas import tpu as pltpu


_VMEM_LIMIT_BYTES = 32 * 1024 * 1024   # scoped VMEM limit (safe on v5e/v6e/v7x)
_VMEM_BUDGET_BYTES = 24 * 1024 * 1024  # budget for double-buffered blocks


# ----------------------------------------------------------------------------
# Fused kernel (primary path): per image -> pooled mean, folded conv+BN,
# sigmoid, broadcast multiply.  x_ref/o_ref blocks: (1, C, HW).
# w_ref: (C, C) BN-scale-folded conv weight; b_ref: folded bias as (C, 1).
# ----------------------------------------------------------------------------
def _fused_arm_kernel(x_ref, w_ref, b_ref, o_ref, *, inv_hw):
    x = x_ref[0]                                                   # (C, HW)
    mean = jnp.sum(x.astype(jnp.float32), axis=1, keepdims=True) * inv_hw
    y = jnp.dot(w_ref[...], mean,
                preferred_element_type=jnp.float32) + b_ref[...]  # (C, 1)
    att = jax.nn.sigmoid(y)                                        # (C, 1)
    o_ref[0] = (x * att).astype(o_ref.dtype)


# ----------------------------------------------------------------------------
# Fallback kernel 1: tiled per-channel sum over HW (masked partial last tile,
# accumulated directly into the resident output block).
# ----------------------------------------------------------------------------
def _pool_kernel(x_ref, sum_ref, *, hw):
    t = pl.program_id(1)

    @pl.when(t == 0)
    def _():
        sum_ref[...] = jnp.zeros_like(sum_ref)

    x = x_ref[0].astype(jnp.float32)                               # (C, HW_TILE)
    lane = jax.lax.broadcasted_iota(jnp.int32, x.shape, 1)
    valid = (t * x.shape[1] + lane) < hw                           # mask OOB lanes
    sum_ref[0] += jnp.sum(jnp.where(valid, x, 0.0), axis=1, keepdims=True)


# ----------------------------------------------------------------------------
# Fallback kernel 2: out = x * att   (att broadcast over the HW lanes)
# ----------------------------------------------------------------------------
def _scale_kernel(x_ref, att_ref, o_ref):
    o_ref[...] = (x_ref[...] * att_ref[...]).astype(o_ref.dtype)


def _fused_forward(x_nch, w_scaled, b_col):
    n, c, hw = x_nch.shape
    itemsize = jnp.dtype(x_nch.dtype).itemsize
    return pl.pallas_call(
        functools.partial(_fused_arm_kernel, inv_hw=1.0 / float(hw)),
        out_shape=jax.ShapeDtypeStruct((n, c, hw), x_nch.dtype),
        grid_spec=pltpu.PrefetchScalarGridSpec(
            num_scalar_prefetch=0,
            grid=(n,),
            in_specs=[
                pl.BlockSpec((1, c, hw), lambda i: (i, 0, 0)),
                pl.BlockSpec((c, c), lambda i: (0, 0)),
                pl.BlockSpec((c, 1), lambda i: (0, 0)),
            ],
            out_specs=pl.BlockSpec((1, c, hw), lambda i: (i, 0, 0)),
        ),
        compiler_params=pltpu.CompilerParams(
            # N axis parallel -> v7x megacore shards images across cores.
            # TODO(synk): for N == 1 on v7x the reduction stays on one core
            # (second-order; the multiply dominates and stays fused here).
            dimension_semantics=("parallel",),
            vmem_limit_bytes=_VMEM_LIMIT_BYTES,
        ),
        cost_estimate=pl.CostEstimate(
            flops=2 * n * c * hw + 2 * n * c * c,
            transcendentals=n * c,
            bytes_accessed=(2 * n * c * hw + c * c + c) * itemsize,
        ),
    )(x_nch, w_scaled, b_col)


def _tiled_forward(x_nch, w_scaled, b_folded):
    n, c, hw = x_nch.shape
    itemsize = jnp.dtype(x_nch.dtype).itemsize

    # HW tile: multiple of 128 lanes, double-buffered in+out blocks within the
    # VMEM budget, capped at 2048 (amortizes per-step overhead, v7x-safe).
    max_tile = max(128, (_VMEM_BUDGET_BYTES // (4 * c * itemsize)) // 128 * 128)
    hw_tile = min(2048, max_tile, -(-hw // 128) * 128)
    n_hw = pl.cdiv(hw, hw_tile)

    # ---- tiled global-average-pool (sum) ------------------------------------
    pooled_sum = pl.pallas_call(
        functools.partial(_pool_kernel, hw=hw),
        out_shape=jax.ShapeDtypeStruct((n, c, 1), jnp.float32),
        grid_spec=pltpu.PrefetchScalarGridSpec(
            num_scalar_prefetch=0,
            grid=(n, n_hw),
            in_specs=[pl.BlockSpec((1, c, hw_tile), lambda i, t: (i, 0, t))],
            out_specs=pl.BlockSpec((1, c, 1), lambda i, t: (i, 0, 0)),
        ),
        compiler_params=pltpu.CompilerParams(
            dimension_semantics=("parallel", "arbitrary"),
            vmem_limit_bytes=_VMEM_LIMIT_BYTES,
        ),
    )(x_nch)

    # Tiny conv(1x1)+BN+sigmoid on pooled means: N*C^2 flops, negligible HBM
    # traffic -> plain JAX (batched (N,C)@(C,C), no per-image M=1 matvecs).
    mean = pooled_sum[:, :, 0] * (1.0 / float(hw))                 # (N, C)
    att = jax.nn.sigmoid(mean @ w_scaled.T + b_folded)             # (N, C)
    att = att.astype(x_nch.dtype).reshape(n, c, 1)

    # ---- tiled broadcast multiply (memory-bound bulk) ------------------------
    return pl.pallas_call(
        _scale_kernel,
        out_shape=jax.ShapeDtypeStruct((n, c, hw), x_nch.dtype),
        grid_spec=pltpu.PrefetchScalarGridSpec(
            num_scalar_prefetch=0,
            grid=(n, n_hw),
            in_specs=[
                pl.BlockSpec((1, c, hw_tile), lambda i, t: (i, 0, t)),
                pl.BlockSpec((1, c, 1), lambda i, t: (i, 0, 0)),
            ],
            out_specs=pl.BlockSpec((1, c, hw_tile), lambda i, t: (i, 0, t)),
        ),
        compiler_params=pltpu.CompilerParams(
            dimension_semantics=("parallel", "parallel"),
            vmem_limit_bytes=_VMEM_LIMIT_BYTES,
        ),
        cost_estimate=pl.CostEstimate(
            flops=n * c * hw,
            transcendentals=0,
            bytes_accessed=(2 * n * c * hw + n * c) * itemsize,
        ),
    )(x_nch, att)


# ----------------------------------------------------------------------------
# Forward (NCHW in -> NCHW out, matching the PyTorch module)
# ----------------------------------------------------------------------------
@functools.partial(jax.jit, static_argnames=("force_tiled",))
def attention_refinement_forward(x_nchw, params, force_tiled=False):
    w, b_conv, gamma, beta, run_mean, run_var = params
    eps = 1e-5
    n, c, h, width = x_nchw.shape
    cout, cin, kh, kw = w.shape
    assert (kh, kw) == (1, 1) and cin == c
    # torch.mul(input, att) broadcast requires out_channels == in_channels.
    assert cout == c

    # Fold BN (eval mode) + conv bias:
    #   att = sigmoid( (mean @ W^T + b - mu) * s + beta ),  s = gamma/sqrt(var+eps)
    #       = sigmoid( mean @ (s * W)^T + ((b - mu) * s + beta) )
    scale = gamma / jnp.sqrt(run_var + eps)                        # (C,)
    w_scaled = (w.reshape(cout, cin) * scale[:, None]).astype(jnp.float32)
    b_folded = ((b_conv - run_mean) * scale + beta).astype(jnp.float32)

    hw = h * width
    # Free reshape (no HBM pass): channels on sublanes, HW on lanes.
    x_nch = x_nchw.reshape(n, c, hw)

    itemsize = jnp.dtype(x_nchw.dtype).itemsize
    # in + out blocks double-buffered + weight/bias.
    fused_bytes = 4 * c * hw * itemsize + 2 * c * c * 4 + 2 * c * 4

    if force_tiled or fused_bytes > _VMEM_BUDGET_BYTES:
        out_nch = _tiled_forward(x_nch, w_scaled, b_folded)
    else:
        out_nch = _fused_forward(x_nch, w_scaled, b_folded.reshape(cout, 1))

    return out_nch.reshape(n, c, h, width)   # free reshape back to NCHW


# ----------------------------------------------------------------------------
# Parameter construction (deterministic, synthetic) and pure-JAX reference
# ----------------------------------------------------------------------------
def make_arm_params(key, in_channels, out_channels):
    kw, kb, kg, kbe, km, kv = jax.random.split(key, 6)
    w = jax.random.normal(kw, (out_channels, in_channels, 1, 1),
                          jnp.float32) * (1.0 / jnp.sqrt(in_channels))
    b_conv = 0.1 * jax.random.normal(kb, (out_channels,), jnp.float32)
    gamma = 1.0 + 0.1 * jax.random.normal(kg, (out_channels,), jnp.float32)
    beta = 0.1 * jax.random.normal(kbe, (out_channels,), jnp.float32)
    run_mean = 0.05 * jax.random.normal(km, (out_channels,), jnp.float32)
    run_var = 1.0 + 0.1 * jax.random.uniform(kv, (out_channels,), jnp.float32)
    return (w, b_conv, gamma, beta, run_mean, run_var)


def _reference_forward(x, params):
    w, b_conv, gamma, beta, run_mean, run_var = params
    eps = 1e-5
    pooled = jnp.mean(x, axis=(2, 3))                              # (N, C)
    y = pooled @ w.reshape(w.shape[0], w.shape[1]).T + b_conv      # (N, Cout)
    z = (y - run_mean) / jnp.sqrt(run_var + eps) * gamma + beta
    att = jax.nn.sigmoid(z)[:, :, None, None]
    return x * att


if __name__ == "__main__":
    key = jax.random.PRNGKey(0)
    k_x, k_p, k_x2 = jax.random.split(key, 3)

    # BiSeNet ARM feature shapes: C a multiple of 128, modest spatial extent.
    N, C, H, W = 2, 128, 16, 16
    x = jax.random.normal(k_x, (N, C, H, W), jnp.float32)
    params = make_arm_params(k_p, C, C)

    # Primary (fused) path.
    out = jax.block_until_ready(attention_refinement_forward(x, params))
    ref = _reference_forward(x, params)
    assert out.shape == (N, C, H, W), out.shape
    assert out.dtype == jnp.float32
    assert bool(jnp.allclose(out, ref, rtol=1e-4, atol=1e-4)), float(
        jnp.max(jnp.abs(out - ref)))

    # Tiled fallback path (used for feature maps too large to keep resident).
    x2 = jax.random.normal(k_x2, (1, C, 64, 64), jnp.float32)
    out2 = jax.block_until_ready(
        attention_refinement_forward(x2, params, force_tiled=True))
    ref2 = _reference_forward(x2, params)
    assert bool(jnp.allclose(out2, ref2, rtol=1e-4, atol=1e-4)), float(
        jnp.max(jnp.abs(out2 - ref2)))

    print("KERNEL_OK")
</pallas_src>

<mosaic_0001>
module attributes {stable_mosaic.version = 11 : i64} {
  func.func @_fused_arm_kernel(%arg0: i32, %arg1: memref<1x128x256xf32, #tpu.memory_space<vmem>>, %arg2: memref<128x128xf32, #tpu.memory_space<vmem>>, %arg3: memref<128x1xf32, #tpu.memory_space<vmem>>, %arg4: memref<1x128x256xf32, #tpu.memory_space<vmem>>) attributes {dimension_semantics = [#tpu.dimension_semantics<parallel>], iteration_bounds = array<i64: 2>, scalar_prefetch = 0 : i64, scratch_operands = 0 : i64, tpu.core_type = #tpu.core_type<tc>, window_params = [{transform_indices = @transform_0, window_bounds = array<i64: 1, 128, 256>}, {pipeline_mode = #tpu.pipeline_mode<synchronous>, transform_indices = @transform_1, window_bounds = array<i64: 128, 128>}, {pipeline_mode = #tpu.pipeline_mode<synchronous>, transform_indices = @transform_2, window_bounds = array<i64: 128, 1>}, {transform_indices = @transform_3, window_bounds = array<i64: 1, 128, 256>}]} {
    %c0 = arith.constant 0 : index
    %c0_0 = arith.constant 0 : index
    %c0_1 = arith.constant 0 : index
    %0 = vector.load %arg1[%c0, %c0_0, %c0_1] : memref<1x128x256xf32, #tpu.memory_space<vmem>>, vector<1x128x256xf32>
    %1 = vector.shape_cast %0 : vector<1x128x256xf32> to vector<128x256xf32>
    %cst = arith.constant dense<0.000000e+00> : vector<128xf32>
    %2 = vector.multi_reduction <add>, %1, %cst [1] : vector<128x256xf32> to vector<128xf32>
    %3 = vector.shape_cast %2 : vector<128xf32> to vector<128x1xf32>
    %cst_2 = arith.constant 3.906250e-03 : f32
    %4 = vector.broadcast %cst_2 : f32 to vector<128x1xf32>
    %5 = arith.mulf %3, %4 : vector<128x1xf32>
    %c0_3 = arith.constant 0 : index
    %c0_4 = arith.constant 0 : index
    %6 = vector.load %arg2[%c0_3, %c0_4] : memref<128x128xf32, #tpu.memory_space<vmem>>, vector<128x128xf32>
    %cst_5 = arith.constant dense<0.000000e+00> : vector<128x1xf32>
    %7 = tpu.matmul %6, %5, %cst_5 {dimension_numbers = #tpu.dot_dimension_numbers<[1], [0], [0], [1], [0, 0, 1, 1], [], []>} : vector<128x128xf32>, vector<128x1xf32>, vector<128x1xf32> -> vector<128x1xf32>
    %c0_6 = arith.constant 0 : index
    %c0_7 = arith.constant 0 : index
    %8 = vector.load %arg3[%c0_6, %c0_7] : memref<128x1xf32, #tpu.memory_space<vmem>>, vector<128x1xf32>
    %9 = arith.addf %7, %8 : vector<128x1xf32>
    %10 = arith.negf %9 : vector<128x1xf32>
    %11 = math.exp %10 : vector<128x1xf32>
    %cst_8 = arith.constant 1.000000e+00 : f32
    %12 = vector.broadcast %cst_8 : f32 to vector<128x1xf32>
    %13 = arith.addf %12, %11 : vector<128x1xf32>
    %14 = arith.divf %12, %13 : vector<128x1xf32>
    %15 = vector.broadcast %14 : vector<128x1xf32> to vector<128x256xf32>
    %16 = arith.mulf %1, %15 : vector<128x256xf32>
    %c0_9 = arith.constant 0 : index
    %c0_10 = arith.constant 0 : index
    %c0_11 = arith.constant 0 : index
    %17 = vector.load %arg4[%c0_9, %c0_10, %c0_11] : memref<1x128x256xf32, #tpu.memory_space<vmem>>, vector<1x128x256xf32>
    %18 = vector.shape_cast %17 : vector<1x128x256xf32> to vector<128x256xf32>
    %19 = vector.shape_cast %16 : vector<128x256xf32> to vector<1x128x256xf32>
    tpu.vector_store %arg4[%c0_9, %c0_10, %c0_11], %19 {strides = array<i32>} : memref<1x128x256xf32, #tpu.memory_space<vmem>>, vector<1x128x256xf32>,
    return
  }
  func.func @transform_0(%arg0: i32) -> (i32, i32, i32) {
    %c0_i32 = arith.constant 0 : i32
    %c0_i32_0 = arith.constant 0 : i32
    %c0_i32_1 = arith.constant 0 : i32
    return %arg0, %c0_i32, %c0_i32_0 : i32, i32, i32
  }
  func.func @transform_1(%arg0: i32) -> (i32, i32) {
    %c0_i32 = arith.constant 0 : i32
    %c0_i32_0 = arith.constant 0 : i32
    %c0_i32_1 = arith.constant 0 : i32
    return %c0_i32, %c0_i32_0 : i32, i32
  }
  func.func @transform_2(%arg0: i32) -> (i32, i32) {
    %c0_i32 = arith.constant 0 : i32
    %c0_i32_0 = arith.constant 0 : i32
    %c0_i32_1 = arith.constant 0 : i32
    return %c0_i32, %c0_i32_0 : i32, i32
  }
  func.func @transform_3(%arg0: i32) -> (i32, i32, i32) {
    %c0_i32 = arith.constant 0 : i32
    %c0_i32_0 = arith.constant 0 : i32
    %c0_i32_1 = arith.constant 0 : i32
    return %arg0, %c0_i32, %c0_i32_0 : i32, i32, i32
  }
}

</mosaic_0001>

<bundles_post_ra>
// kernel: attention_refinement_forward.1
= control target key start
LH: loop header
LB: loop body
LE: loop exit
PB: predicated region body
PF: predicated region fallthrough
CT: control target
= control target key end

     0   :  { %s1081_s12 = smov 0   ;;  %s1616_s0 = inlined_call_operand.vmem [shape: f32[2,128,256], index: 0, kind: input, shape index: {}]   ;;  %s1617_s1 = inlined_call_operand.vmem [shape: f32[128,128], index: 1, kind: input, shape index: {}]   ;;  %s1618_s2 = inlined_call_operand.vmem [shape: f32[128,1], index: 2, kind: input, shape index: {}]   ;;  %s1619_s3 = inlined_call_operand.vmem [shape: f32[2,128,256], index: 3, kind: output, shape index: {}]  }
   0x1 LB: > { %s867_s13 = sadd.s32 4294967295, %s1058_s12   ;;  %p871_p0 = scmp.ge.s32.totalorder %s1058_s12, 1  ;;  %s1058_s12 = sphi %s1081_s12, %s13_s12  }
   0x2   : > { %p137_p1 = scmp.lt.s32.totalorder %s1058_s12, 3 }
   0x4   : > { %p138_p2 = pnand %p871_p0, %p137_p1 }
   0x5   : > { %p161_p3 = scmp.lt.s32.totalorder (!%p138_p2), %s867_s13, 1 }
   0x6   : > { %141 = sbr.rel (%p138_p2) target bundleno = 502 (0x1f6), region = 32 }
   0xb   : > { %s1645_s13 = smov (!%p161_p3, %s867_s13), 1 }
   0xc   : > { %s894_s14 = sshll.u32 %s1645_s13, 8 }
   0xd   : > { %s1097_s17 = scalar_lea.vmem %s1616_s0, %s894_s14  ;;  %s1547_s11 = scalar_lea.vmem %s1619_s3, %s894_s14 }
   0xe   : > { %v201_v0 = vld [vmem:[%s1097_s17 + $0xf0] sm:$0xff]  ;;  %v202_v1 = vld [vmem:[%s1097_s17 + $0xf8] sm:$0xff]  ;;  %v199_v9 = vld [vmem:[%s1097_s17 + $0xe0] sm:$0xff] }
   0xf   : > { %v197_v2 = vld [vmem:[%s1097_s17 + $0xd0] sm:$0xff]  ;;  %v248_v3 = vadd.f32 %v202_v1, %v201_v0  ;;  %v198_v4 = vld [vmem:[%s1097_s17 + $0xd8] sm:$0xff]  ;;  %v200_v10 = vld [vmem:[%s1097_s17 + $0xe8] sm:$0xff] }
  0x10   : > { %v193_v5 = vld [vmem:[%s1097_s17 + $0xb0] sm:$0xff]  ;;  %v194_v6 = vld [vmem:[%s1097_s17 + $0xb8] sm:$0xff]  ;;  %v242_v7 = vadd.f32 %v198_v4, %v197_v2  ;;  %v195_v11 = vld [vmem:[%s1097_s17 + $0xc0] sm:$0xff]  ;;  %v245_v15 = vadd.f32 %v200_v10, %v199_v9 }
  0x11   : > { %v236_v8 = vadd.f32 %v194_v6, %v193_v5  ;;  %249 = vadd.xlane.f32.xlu0 %v248_v3  ;;  %v196_v12 = vld [vmem:[%s1097_s17 + $0xc8] sm:$0xff]  ;;  %v191_v13 = vld [vmem:[%s1097_s17 + $0xa0] sm:$0xff]  ;;  %v189_v18 = vld [vmem:[%s1097_s17 + $0x90] sm:$0xff] }
  0x12   : > { %243 = vadd.xlane.f32.xlu1 %v242_v7  ;;  %v192_v14 = vld [vmem:[%s1097_s17 + $0xa8] sm:$0xff]  ;;  %v239_v16 = vadd.f32 %v196_v12, %v195_v11  ;;  %v190_v19 = vld [vmem:[%s1097_s17 + $0x98] sm:$0xff]  ;;  %v187_v20 = vld [vmem:[%s1097_s17 + $0x80] sm:$0xff] }
  0x13   : > { %237 = vadd.xlane.f32.xlu2 %v236_v8  ;;  %v233_v17 = vadd.f32 %v192_v14, %v191_v13  ;;  %v188_v21 = vld [vmem:[%s1097_s17 + $0x88] sm:$0xff]  ;;  %v185_v22 = vld [vmem:[%s1097_s17 + $0x70] sm:$0xff]  ;;  %v186_v23 = vld [vmem:[%s1097_s17 + $0x78] sm:$0xff]  ;;  %v230_v24 = vadd.f32 %v190_v19, %v189_v18 }
  0x14   : > { %v227_v25 = vadd.f32 %v188_v21, %v187_v20  ;;  %v224_v26 = vadd.f32 %v186_v23, %v185_v22  ;;  %v183_v27 = vld [vmem:[%s1097_s17 + $0x60] sm:$0xff]  ;;  %v184_v28 = vld [vmem:[%s1097_s17 + $0x68] sm:$0xff]  ;;  %v181_v29 = vld [vmem:[%s1097_s17 + $0x50] sm:$0xff] }
  0x15   : > { %v182_v30 = vld [vmem:[%s1097_s17 + $0x58] sm:$0xff]  ;;  %v179_v31 = vld [vmem:[%s1097_s17 + $0x40] sm:$0xff]  ;;  %v180_v32 = vld [vmem:[%s1097_s17 + $0x48] sm:$0xff]  ;;  %v221_v33 = vadd.f32 %v184_v28, %v183_v27 }
  0x16   : > { %v218_v34 = vadd.f32 %v182_v30, %v181_v29  ;;  %v215_v35 = vadd.f32 %v180_v32, %v179_v31  ;;  %v177_v36 = vld [vmem:[%s1097_s17 + $0x30] sm:$0xff]  ;;  %v178_v37 = vld [vmem:[%s1097_s17 + $0x38] sm:$0xff]  ;;  %v175_v38 = vld [vmem:[%s1097_s17 + $0x20] sm:$0xff] }
  0x17   : > { %v176_v39 = vld [vmem:[%s1097_s17 + $0x28] sm:$0xff]  ;;  %v173_v40 = vld [vmem:[%s1097_s17 + $0x10] sm:$0xff]  ;;  %v174_v41 = vld [vmem:[%s1097_s17 + $0x18] sm:$0xff]  ;;  %v212_v42 = vadd.f32 %v178_v37, %v177_v36 }
  0x18   : > { %v209_v43 = vadd.f32 %v176_v39, %v175_v38  ;;  %v206_v44 = vadd.f32 %v174_v41, %v173_v40  ;;  %v171_v45 = vld [vmem:[%s1097_s17] sm:$0xff]  ;;  %v172_v46 = vld [vmem:[%s1097_s17 + $0x8] sm:$0xff]  ;;  %v281_v27 = vld [vmem:[%s1617_s1 + $0x70] sm:$0xff]  ;;  %v1060_v38 = vmov 0  }
  0x19   : > { %246 = vadd.xlane.f32.xlu0 %v245_v15  ;;  %v203_v47 = vadd.f32 %v172_v46, %v171_v45  ;;  %v275_v18 = vld [vmem:[%s1617_s1 + $0x40] sm:$0xff]  ;;  %v268_v20 = vld [vmem:[%s1617_s1 + $0x8] sm:$0xff]  ;;  %v270_v28 = vld [vmem:[%s1617_s1 + $0x18] sm:$0xff]  ;;  %953 = vset.pattern.permute.xlu1 %v1060_v38 }
  0x1a   : > { %240 = vadd.xlane.f32.xlu1 %v239_v16  ;;  %v267_v16 = vld [vmem:[%s1617_s1] sm:$0xff]  ;;  %v272_v21 = vld [vmem:[%s1617_s1 + $0x28] sm:$0xff]  ;;  %v274_v29 = vld [vmem:[%s1617_s1 + $0x38] sm:$0xff]  ;;  %954 = vset.pattern.permute.xlu0 %v1060_v38 }
  0x1b   : > { %234 = vadd.xlane.f32.xlu2 %v233_v17  ;;  %v271_v17 = vld [vmem:[%s1617_s1 + $0x20] sm:$0xff]  ;;  %v276_v22 = vld [vmem:[%s1617_s1 + $0x48] sm:$0xff]  ;;  %v278_v30 = vld [vmem:[%s1617_s1 + $0x58] sm:$0xff] }
  0x1c   : > { %v279_v19 = vld [vmem:[%s1617_s1 + $0x60] sm:$0xff]  ;;  %v280_v23 = vld [vmem:[%s1617_s1 + $0x68] sm:$0xff]  ;;  %v282_v31 = vld [vmem:[%s1617_s1 + $0x78] sm:$0xff]  ;;  %955 = vset.pattern.permute.xlu2 %v1060_v38 }
  0x1d   : > { %v283_v32 = vld [vmem:[%s1618_s2] sm:$0xff] }
  0x1e   : > { %v291_v41 = vld [vmem:[%s1618_s2 + $0x40] sm:$0xff] }
  0x21   : > { %231 = vadd.xlane.f32.xlu0 %v230_v24  ;;  %v273_v24 = vld [vmem:[%s1617_s1 + $0x30] sm:$0xff] }
  0x22   : > { %228 = vadd.xlane.f32.xlu1 %v227_v25  ;;  %v269_v25 = vld [vmem:[%s1617_s1 + $0x10] sm:$0xff] }
  0x23   : > { %225 = vadd.xlane.f32.xlu2 %v224_v26  ;;  %v277_v26 = vld [vmem:[%s1617_s1 + $0x50] sm:$0xff] }
  0x29   : > { %222 = vadd.xlane.f32.xlu0 %v221_v33  ;;  %v287_v33 = vld [vmem:[%s1618_s2 + $0x20] sm:$0xff] }
  0x2a   : > { %219 = vadd.xlane.f32.xlu1 %v218_v34 }
  0x2b   : > { %216 = vadd.xlane.f32.xlu2 %v215_v35 }
  0x31   : > { %213 = vadd.xlane.f32.xlu0 %v212_v42  ;;  %v295_v42 = vld [vmem:[%s1618_s2 + $0x60] sm:$0xff] }
  0x32   : > { %210 = vadd.xlane.f32.xlu1 %v209_v43  ;;  %v284_v43 = vld [vmem:[%s1618_s2 + $0x8] sm:$0xff] }
  0x33   : > { %207 = vadd.xlane.f32.xlu2 %v206_v44  ;;  %v288_v44 = vld [vmem:[%s1618_s2 + $0x28] sm:$0xff] }
  0x39   : > { %204 = vadd.xlane.f32.xlu0 %v203_v47 }
  0x84   : > { %v250_v48 = vpop.xlane.xlu0 %249 }
  0x85   : > { %v266_v49 = vmul.f32 0.00390625, %v250_v48  ;;  %v244_v50 = vpop.xlane.xlu1 %243 }
  0x86   : > { %v238_v51 = vpop.xlane.xlu2 %237  ;;  %v264_v56 = vmul.f32 0.00390625, %v244_v50 }
  0x87   : > { %299 = vmatpush.msra.mxu0 %v266_v49  ;;  %896 = vmatpush.msra.mxu1 %v266_v49  ;;  %v262_v58 = vmul.f32 0.00390625, %v238_v51 }
  0x88   : > { %897 = vmatpush.msra.mxu2 %v266_v49  ;;  %898 = vmatpush.msra.mxu3 %v266_v49 }
  0x8c   : > { %v247_v52 = vpop.xlane.xlu0 %246 }
  0x8d   : > { %v265_v53 = vmul.f32 0.00390625, %v247_v52  ;;  %v241_v54 = vpop.xlane.xlu1 %240 }
  0x8e   : > { %v235_v55 = vpop.xlane.xlu2 %234  ;;  %v263_v57 = vmul.f32 0.00390625, %v241_v54 }
  0x8f   : > { %300 = vmatpush.msra.mxu0 %v265_v53  ;;  %899 = vmatpush.msra.mxu1 %v265_v53  ;;  %v261_v60 = vmul.f32 0.00390625, %v235_v55 }
  0x90   : > { %900 = vmatpush.msra.mxu2 %v265_v53  ;;  %901 = vmatpush.msra.mxu3 %v265_v53 }
  0x91   : > { %301 = vmatpush.msra.mxu0 %v264_v56  ;;  %902 = vmatpush.msra.mxu1 %v264_v56 }
  0x92   : > { %903 = vmatpush.msra.mxu2 %v264_v56  ;;  %904 = vmatpush.msra.mxu3 %v264_v56 }
  0x93   : > { %302 = vmatpush.msra.mxu0 %v263_v57  ;;  %905 = vmatpush.msra.mxu1 %v263_v57 }
  0x94   : > { %906 = vmatpush.msra.mxu2 %v263_v57  ;;  %907 = vmatpush.msra.mxu3 %v263_v57  ;;  %v232_v59 = vpop.xlane.xlu0 %231 }
  0x95   : > { %303 = vmatpush.msra.mxu0 %v262_v58  ;;  %908 = vmatpush.msra.mxu1 %v262_v58  ;;  %v229_v61 = vpop.xlane.xlu1 %228  ;;  %v260_v63 = vmul.f32 0.00390625, %v232_v59 }
  0x96   : > { %v226_v62 = vpop.xlane.xlu2 %225  ;;  %909 = vmatpush.msra.mxu2 %v262_v58  ;;  %910 = vmatpush.msra.mxu3 %v262_v58  ;;  %v259_v0 = vmul.f32 0.00390625, %v229_v61  ;;  %v292_v61 = vld [vmem:[%s1618_s2 + $0x48] sm:$0xff] }
  0x97   : > { %304 = vmatpush.msra.mxu0 %v261_v60  ;;  %911 = vmatpush.msra.mxu1 %v261_v60  ;;  %v258_v1 = vmul.f32 0.00390625, %v226_v62  ;;  %v296_v62 = vld [vmem:[%s1618_s2 + $0x68] sm:$0xff] }
  0x98   : > { %912 = vmatpush.msra.mxu2 %v261_v60  ;;  %913 = vmatpush.msra.mxu3 %v261_v60 }
  0x99   : > { %305 = vmatpush.msra.mxu0 %v260_v63  ;;  %914 = vmatpush.msra.mxu1 %v260_v63 }
  0x9a   : > { %915 = vmatpush.msra.mxu2 %v260_v63  ;;  %916 = vmatpush.msra.mxu3 %v260_v63  ;;  %v289_v63 = vld [vmem:[%s1618_s2 + $0x30] sm:$0xff] }
  0x9b   : > { %306 = vmatpush.msra.mxu0 %v259_v0  ;;  %917 = vmatpush.msra.mxu1 %v259_v0 }
  0x9c   : > { %918 = vmatpush.msra.mxu2 %v259_v0  ;;  %919 = vmatpush.msra.mxu3 %v259_v0  ;;  %v223_v2 = vpop.xlane.xlu0 %222 }
  0x9d   : > { %v257_v3 = vmul.f32 0.00390625, %v223_v2  ;;  %307 = vmatpush.msra.mxu0 %v258_v1  ;;  %920 = vmatpush.msra.mxu1 %v258_v1  ;;  %v220_v4 = vpop.xlane.xlu1 %219  ;;  %v285_v2 = vld [vmem:[%s1618_s2 + $0x10] sm:$0xff] }
  0x9e   : > { %v217_v5 = vpop.xlane.xlu2 %216  ;;  %921 = vmatpush.msra.mxu2 %v258_v1  ;;  %922 = vmatpush.msra.mxu3 %v258_v1  ;;  %v256_v6 = vmul.f32 0.00390625, %v220_v4 }
  0x9f   : > { %308 = vmatpush.msra.mxu0 %v257_v3  ;;  %923 = vmatpush.msra.mxu1 %v257_v3  ;;  %v255_v7 = vmul.f32 0.00390625, %v217_v5 }
  0xa0   : > { %924 = vmatpush.msra.mxu2 %v257_v3  ;;  %925 = vmatpush.msra.mxu3 %v257_v3 }
  0xa1   : > { %309 = vmatpush.msra.mxu0 %v256_v6  ;;  %926 = vmatpush.msra.mxu1 %v256_v6 }
  0xa2   : > { %927 = vmatpush.msra.mxu2 %v256_v6  ;;  %928 = vmatpush.msra.mxu3 %v256_v6 }
  0xa3   : > { %310 = vmatpush.msra.mxu0 %v255_v7  ;;  %929 = vmatpush.msra.mxu1 %v255_v7 }
  0xa4   : > { %v214_v8 = vpop.xlane.xlu0 %213  ;;  %930 = vmatpush.msra.mxu2 %v255_v7  ;;  %931 = vmatpush.msra.mxu3 %v255_v7 }
  0xa5   : > { %v254_v9 = vmul.f32 0.00390625, %v214_v8  ;;  %v211_v10 = vpop.xlane.xlu1 %210 }
  0xa6   : > { %v208_v11 = vpop.xlane.xlu2 %207  ;;  %v253_v12 = vmul.f32 0.00390625, %v211_v10 }
  0xa7   : > { %311 = vmatpush.msra.mxu0 %v254_v9  ;;  %932 = vmatpush.msra.mxu1 %v254_v9  ;;  %v252_v13 = vmul.f32 0.00390625, %v208_v11 }
  0xa8   : > { %933 = vmatpush.msra.mxu2 %v254_v9  ;;  %934 = vmatpush.msra.mxu3 %v254_v9 }
  0xa9   : > { %312 = vmatpush.msra.mxu0 %v253_v12  ;;  %935 = vmatpush.msra.mxu1 %v253_v12 }
  0xaa   : > { %936 = vmatpush.msra.mxu2 %v253_v12  ;;  %937 = vmatpush.msra.mxu3 %v253_v12 }
  0xab   : > { %313 = vmatpush.msra.mxu0 %v252_v13  ;;  %938 = vmatpush.msra.mxu1 %v252_v13 }
  0xac   : > { %v205_v14 = vpop.xlane.xlu0 %204  ;;  %939 = vmatpush.msra.mxu2 %v252_v13  ;;  %940 = vmatpush.msra.mxu3 %v252_v13 }
  0xad   : > { %v251_v15 = vmul.f32 0.00390625, %v205_v14 }
  0xaf   : > { %314 = vmatpush.msra.mxu0 %v251_v15  ;;  %941 = vmatpush.msra.mxu1 %v251_v15 }
  0xb0   : > { %942 = vmatpush.msra.mxu2 %v251_v15  ;;  %943 = vmatpush.msra.mxu3 %v251_v15 }
  0xb1   : > { %315 = vmatmul.f32.vlgmr.msra.gmra.mxu0 %v267_v16  ;;  %327 = vmatmul.f32.vlgmr.msra.gmra.mxu1 %v271_v17 }
  0xb2   : > { %339 = vmatmul.f32.vlgmr.msra.gmra.mxu2 %v275_v18  ;;  %351 = vmatmul.f32.vlgmr.msra.gmra.mxu3 %v279_v19 }
  0xb9   : > { %318 = vmatmul.f32.gmra.mxu0 %v268_v20  ;;  %330 = vmatmul.f32.gmra.mxu1 %v272_v21 }
  0xba   : > { %342 = vmatmul.f32.gmra.mxu2 %v276_v22  ;;  %354 = vmatmul.f32.gmra.mxu3 %v280_v23  ;;  %v293_v22 = vld [vmem:[%s1618_s2 + $0x50] sm:$0xff] }
  0xbb   : > { %v297_v23 = vld [vmem:[%s1618_s2 + $0x70] sm:$0xff] }
  0xc1   : > { %333 = vmatmul.f32.gmra.mxu1 %v273_v24  ;;  %321 = vmatmul.f32.gmra.mxu0 %v269_v25 }
  0xc2   : > { %345 = vmatmul.f32.gmra.mxu2 %v277_v26  ;;  %357 = vmatmul.f32.gmra.mxu3 %v281_v27 }
  0xc9   : > { %324 = vmatmul.f32.gmra.mxu0 %v270_v28  ;;  %336 = vmatmul.f32.gmra.mxu1 %v274_v29  ;;  %v286_v29 = vld [vmem:[%s1618_s2 + $0x18] sm:$0xff] }
  0xca   : > { %348 = vmatmul.f32.gmra.mxu2 %v278_v30  ;;  %360 = vmatmul.f32.gmra.mxu3 %v282_v31 }
 0x12e   : > { %v316_v34 = vpop.f32.mrf.mxu0  ;;  %v328_v35 = vpop.f32.mrf.mxu1 }
 0x12f   : > { %v317_v36 = vadd.f32 %v316_v34, %v283_v32  ;;  %v329_v37 = vadd.f32 %v328_v35, %v287_v33 }
 0x131   : > { %v876_v39 = vmul.f32 -1.442695, %v317_v36  ;;  %v880_v40 = vmul.f32 -1.442695, %v329_v37 }
 0x133   : > { %956 = vpow2.f32 %v876_v39 }
 0x134   : > { %958 = vpow2.f32 %v880_v40 }
 0x135   : > { %v340_v45 = vpop.f32.mrf.mxu2  ;;  %v352_v46 = vpop.f32.mrf.mxu3 }
 0x136   : > { %v341_v47 = vadd.f32 %v340_v45, %v291_v41  ;;  %v353_v48 = vadd.f32 %v352_v46, %v295_v42  ;;  %v319_v49 = vpop.f32.mrf.mxu0  ;;  %v331_v50 = vpop.f32.mrf.mxu1 }
 0x137   : > { %v320_v51 = vadd.f32 %v319_v49, %v284_v43  ;;  %v332_v52 = vadd.f32 %v331_v50, %v288_v44 }
 0x138   : > { %v884_v53 = vmul.f32 -1.442695, %v341_v47  ;;  %v888_v54 = vmul.f32 -1.442695, %v353_v48 }
 0x139   : > { %v957_v55 = vpop.eup %956  ;;  %v877_v58 = vmul.f32 -1.442695, %v320_v51  ;;  %v881_v60 = vmul.f32 -1.442695, %v332_v52 }
 0x13a   : > { %v959_v56 = vpop.eup %958  ;;  %v1197_v57 = vadd.f32 1.0, %v957_v55  ;;  %960 = vpow2.f32 %v884_v53 }
 0x13b   : > { %v1199_v59 = vadd.f32 1.0, %v959_v56  ;;  %962 = vpow2.f32 %v888_v54 }
 0x13c   : > { %964 = vrcp.f32 %v1197_v57  ;;  %v437_v8 = vand.u32 2147483647, %v1197_v57  ;;  %v439_v9 = vand.u32 2147483648, %v1197_v57  ;;  %vm433_vm0 = vweird.f32 %v1197_v57 }
 0x13d   : > { %966 = vrcp.f32 %v1199_v59  ;;  %v343_v0 = vpop.f32.mrf.mxu2  ;;  %v355_v1 = vpop.f32.mrf.mxu3  ;;  %v499_v13 = vand.u32 2147483648, %v1199_v59  ;;  %v497_v20 = vand.u32 2147483647, %v1199_v59  ;;  %vm493_vm4 = vweird.f32 %v1199_v59 }
 0x13e   : > { %968 = vpow2.f32 %v877_v58  ;;  %v344_v3 = vadd.f32 %v343_v0, %v292_v61  ;;  %v356_v4 = vadd.f32 %v355_v1, %v296_v62  ;;  %v334_v5 = vpop.f32.mrf.mxu1  ;;  %v322_v6 = vpop.f32.mrf.mxu0  ;;  %vm1237_vm1 = vcmp.eq.f32.partialorder %v437_v8, 8.507059e+37  ;;  %v294_v58 = vld [vmem:[%s1618_s2 + $0x58] sm:$0xff] }
 0x13f   : > { %970 = vpow2.f32 %v881_v60  ;;  %v335_v7 = vadd.f32 %v334_v5, %v289_v63  ;;  %v323_v12 = vadd.f32 %v322_v6, %v285_v2  ;;  %v440_v26 = vor.u32 1.1754944e-38, %v439_v9 }
 0x140   : > { %v961_v10 = vpop.eup %960  ;;  %v885_v11 = vmul.f32 -1.442695, %v344_v3  ;;  %v889_v16 = vmul.f32 -1.442695, %v356_v4  ;;  %v1246_v30 = vor.u32 1.1754944e-38, %v499_v13  ;;  %vm1304_vm9 = vcmp.eq.f32.partialorder %v497_v20, 8.507059e+37 }
 0x141   : > { %v963_v14 = vpop.eup %962  ;;  %v1218_v15 = vadd.f32 1.0, %v961_v10  ;;  %v882_v19 = vmul.f32 -1.442695, %v335_v7  ;;  %v878_v28 = vmul.f32 -1.442695, %v323_v12 }
 0x142   : > { %v1221_v17 = vpop.eup %964  ;;  %v1223_v18 = vadd.f32 1.0, %v963_v14  ;;  %972 = vpow2.f32 %v885_v11 }
 0x143   : > { %v1226_v21 = vpop.eup %966  ;;  %974 = vrcp.f32 %v1218_v15  ;;  %v429_v24 = vmul.f32 %v1221_v17, %v1197_v57  ;;  %vm434_vm2 = vweird.f32 %v1221_v17  ;;  %v298_v57 = vld [vmem:[%s1618_s2 + $0x78] sm:$0xff] }
 0x144   : > { %v969_v27 = vpop.eup %968  ;;  %976 = vrcp.f32 %v1223_v18  ;;  %v619_v36 = vand.u32 2147483648, %v1223_v18  ;;  %vm613_vm3 = vweird.f32 %v1223_v18  ;;  %v617_v43 = vand.u32 2147483647, %v1223_v18  ;;  %vm1272_vm5 = vmor %vm433_vm0, %vm434_vm2 }
 0x145   : > { %v971_v31 = vpop.eup %970  ;;  %v1248_v32 = vadd.f32 1.0, %v969_v27  ;;  %978 = vpow2.f32 %v889_v16  ;;  %v346_v33 = vpop.f32.mrf.mxu2  ;;  %v430_v35 = vsub.f32 1.0, %v429_v24  ;;  %v489_v47 = vmul.f32 %v1226_v21, %v1199_v59 }
 0x146   : > { %v358_v34 = vpop.f32.mrf.mxu3  ;;  %v1251_v37 = vadd.f32 1.0, %v971_v31  ;;  %980 = vpow2.f32 %v882_v19  ;;  %v347_v38 = vadd.f32 %v346_v33, %v293_v22  ;;  %v325_v40 = vpop.f32.mrf.mxu0  ;;  %v620_v54 = vor.u32 1.1754944e-38, %v619_v36  ;;  %v290_v19 = vld [vmem:[%s1618_s2 + $0x38] sm:$0xff] }
 0x147   : > { %v359_v39 = vadd.f32 %v358_v34, %v297_v23  ;;  %982 = vrcp.f32 %v1248_v32  ;;  %v431_v41 = vmul.f32 %v1221_v17, %v430_v35  ;;  %v326_v42 = vadd.f32 %v325_v40, %v286_v29  ;;  %v337_v20 = vpop.f32.mrf.mxu1 }
 0x148   : > { %v973_v44 = vpop.eup %972  ;;  %984 = vrcp.f32 %v1251_v37  ;;  %v886_v45 = vmul.f32 -1.442695, %v347_v38  ;;  %vm448_vm6 = vweird.f32 %v1248_v32  ;;  %v454_v55 = vand.u32 2147483648, %v1248_v32 }
 0x149   : > { %v890_v46 = vmul.f32 -1.442695, %v359_v39  ;;  %v1260_v48 = vpop.eup %974  ;;  %v1262_v49 = vadd.f32 1.0, %v973_v44  ;;  %986 = vpow2.f32 %v878_v28  ;;  %v432_v50 = vadd.f32 %v1221_v17, %v431_v41 }
 0x14a   : > { %v879_v51 = vmul.f32 -1.442695, %v326_v42  ;;  %v1266_v52 = vpop.eup %976  ;;  %988 = vpow2.f32 %v886_v45  ;;  %vm1290_vm7 = vcmp.eq.f32.partialorder %v617_v43, 8.507059e+37  ;;  %v452_v63 = vand.u32 2147483647, %v1248_v32 }
 0x14b   : > { %v979_v56 = vpop.eup %978  ;;  %990 = vrcp.f32 %v1262_v49  ;;  %v436_v60 = vsel %vm1272_vm5, %v1221_v17, %v432_v50  ;;  %v609_v61 = vmul.f32 %v1266_v52, %v1223_v18  ;;  %vm614_vm8 = vweird.f32 %v1266_v52 }
 0x14c   : > { %v981_v0 = vpop.eup %980  ;;  %v1295_v1 = vadd.f32 1.0, %v979_v56  ;;  %992 = vpow2.f32 %v890_v46  ;;  %v441_v2 = vsel %vm1237_vm1, %v440_v26, %v436_v60  ;;  %v455_v8 = vor.u32 1.1754944e-38, %v454_v55  ;;  %vm615_vm12 = vmor %vm613_vm3, %vm614_vm8 }
 0x14d   : > { %v983_v3 = vpop.eup %982  ;;  %v1300_v4 = vadd.f32 1.0, %v981_v0  ;;  %v349_v5 = vpop.f32.mrf.mxu2  ;;  %670 = vperm.xlu1 %953, %v441_v2   ;;  %994 = vpow2.f32 %v879_v51  ;;  %v610_v7 = vsub.f32 1.0, %v609_v61  ;;  %v490_v17 = vsub.f32 1.0, %v489_v47 }
 0x14e   : > { %v361_v6 = vpop.f32.mrf.mxu3  ;;  %v1308_v10 = vpop.eup %984  ;;  %996 = vrcp.f32 %v1295_v1  ;;  %v350_v11 = vadd.f32 %v349_v5, %v294_v58  ;;  %v444_v13 = vmul.f32 %v983_v3, %v1248_v32  ;;  %vm449_vm10 = vweird.f32 %v983_v3 }
 0x14f   : > { %v362_v12 = vadd.f32 %v361_v6, %v298_v57  ;;  %v987_v14 = vpop.eup %986  ;;  %998 = vrcp.f32 %v1300_v4  ;;  %v611_v16 = vmul.f32 %v1266_v52, %v610_v7  ;;  %v491_v31 = vmul.f32 %v1226_v21, %v490_v17  ;;  %vm1337_vm13 = vmor %vm448_vm6, %vm449_vm10 }
 0x150   : > { %v989_v22 = vpop.eup %988  ;;  %v1317_v23 = vadd.f32 1.0, %v987_v14  ;;  %v887_v24 = vmul.f32 -1.442695, %v350_v11  ;;  %v445_v26 = vsub.f32 1.0, %v444_v13  ;;  %vm494_vm11 = vweird.f32 %v1226_v21 }
 0x151   : > { %v891_v25 = vmul.f32 -1.442695, %v362_v12  ;;  %v991_v27 = vpop.eup %990  ;;  %v1319_v28 = vadd.f32 1.0, %v989_v22  ;;  %v612_v29 = vadd.f32 %v1266_v52, %v611_v16  ;;  %v338_v35 = vadd.f32 %v337_v20, %v290_v19  ;;  %vm495_vm15 = vmor %vm493_vm4, %vm494_vm11 }
 0x152   : > { %v993_v33 = vpop.eup %992  ;;  %1000 = vrcp.f32 %v1317_v23  ;;  %v446_v34 = vmul.f32 %v983_v3, %v445_v26  ;;  %v564_v36 = vmul.f32 %v991_v27, %v1262_v49  ;;  %v492_v18 = vadd.f32 %v1226_v21, %v491_v31 }
 0x153   : > { %v995_v38 = vpop.eup %994  ;;  %1002 = vrcp.f32 %v1319_v28  ;;  %v1331_v39 = vadd.f32 1.0, %v993_v33  ;;  %v616_v40 = vsel %vm615_vm12, %v1266_v52, %v612_v29  ;;  %vm453_vm14 = vcmp.eq.f32.partialorder %v452_v63, 8.507059e+37 }
 0x154   : > { %v1342_v42 = vpop.eup %996  ;;  %1004 = vpow2.f32 %v887_v24  ;;  %v621_v43 = vsel %vm1290_vm7, %v620_v54, %v616_v40  ;;  %v447_v44 = vadd.f32 %v983_v3, %v446_v34  ;;  %v1352_v45 = vadd.f32 1.0, %v995_v38 }
 0x155   : > { %v1350_v32 = vpop.eup %998  ;;  %730 = vperm.xlu0 %954, %v621_v43   ;;  %v496_v46 = vsel %vm495_vm15, %v1226_v21, %v492_v18  ;;  %v883_v47 = vmul.f32 -1.442695, %v338_v35  ;;  %v565_v50 = vsub.f32 1.0, %v564_v36  ;;  %1006 = vpow2.f32 %v891_v25 }
 0x156   : > { %v451_v51 = vsel %vm1337_vm13, %v983_v3, %v447_v44  ;;  %v501_v52 = vsel %vm1304_vm9, %v1246_v30, %v496_v46  ;;  %1008 = vrcp.f32 %v1331_v39  ;;  %vm569_vm0 = vweird.f32 %v991_v27 }
 0x157   : > { %v456_v59 = vsel %vm453_vm14, %v455_v8, %v451_v51  ;;  %690 = vperm.xlu1 %953, %v501_v52   ;;  %v566_v53 = vmul.f32 %v991_v27, %v565_v50  ;;  %1010 = vpow2.f32 %v883_v47  ;;  %v572_v21 = vand.u32 2147483647, %v1262_v49 }
 0x158   : > { %v1361_v54 = vpop.eup %1000  ;;  %675 = vperm.xlu2 %955, %v456_v59   ;;  %v574_v55 = vand.u32 2147483648, %v1262_v49  ;;  %v504_v56 = vmul.f32 %v1308_v10, %v1251_v37  ;;  %1012 = vrcp.f32 %v1352_v45  ;;  %vm568_vm1 = vweird.f32 %v1262_v49 }
 0x159   : > { %v1367_v58 = vpop.eup %1002  ;;  %v567_v30 = vadd.f32 %v991_v27, %v566_v53  ;;  %v512_v57 = vand.u32 2147483647, %v1251_v37  ;;  %vm553_vm2 = vweird.f32 %v1218_v15  ;;  %vm570_vm3 = vmor %vm568_vm1, %vm569_vm0  ;;  %vm508_vm4 = vweird.f32 %v1251_v37 }
 0x15a   : > { %v1005_v60 = vpop.eup %1004  ;;  %v575_v61 = vor.u32 1.1754944e-38, %v574_v55  ;;  %v505_v62 = vsub.f32 1.0, %v504_v56  ;;  %v514_v63 = vand.u32 2147483648, %v1251_v37  ;;  %vm573_vm5 = vcmp.eq.f32.partialorder %v572_v21, 8.507059e+37 }
 0x15b   : > { %v1375_v0 = vadd.f32 1.0, %v1005_v60  ;;  %v571_v2 = vsel %vm570_vm3, %v991_v27, %v567_v30  ;;  %v549_v3 = vmul.f32 %v1260_v48, %v1218_v15  ;;  %v1007_v49 = vpop.eup %1006  ;;  %vm509_vm6 = vweird.f32 %v1308_v10  ;;  %v1020_v60 = vld [vmem:[%s1097_s17 + $0x10] sm:$0xff] }
 0x15c   : > { %v576_v5 = vsel %vm573_vm5, %v575_v61, %v571_v2  ;;  %v506_v6 = vmul.f32 %v1308_v10, %v505_v62  ;;  %vm1381_vm7 = vcmp.eq.f32.partialorder %v512_v57, 8.507059e+37  ;;  %v1385_v8 = vpop.eup %1008  ;;  %v1387_v9 = vadd.f32 1.0, %v1007_v49  ;;  %vm510_vm8 = vmor %vm508_vm4, %vm509_vm6 }
 0x15d   : > { %715 = vperm.xlu0 %954, %v576_v5   ;;  %v515_v11 = vor.u32 1.1754944e-38, %v514_v63  ;;  %v550_v12 = vsub.f32 1.0, %v549_v3  ;;  %v557_v13 = vand.u32 2147483647, %v1218_v15  ;;  %v1011_v14 = vpop.eup %1010  ;;  %1014 = vrcp.f32 %v1375_v0 }
 0x15e   : > { %v507_v16 = vadd.f32 %v1308_v10, %v506_v6  ;;  %v559_v17 = vand.u32 2147483648, %v1218_v15  ;;  %v459_v19 = vmul.f32 %v1361_v54, %v1317_v23  ;;  %v1395_v20 = vpop.eup %1012  ;;  %1016 = vrcp.f32 %v1387_v9 }
 0x15f   : > { %v1398_v22 = vadd.f32 1.0, %v1011_v14  ;;  %v551_v24 = vmul.f32 %v1260_v48, %v550_v12  ;;  %vm554_vm9 = vweird.f32 %v1260_v48  ;;  %vm463_vm10 = vweird.f32 %v1317_v23 }
 0x160   : > { %v511_v25 = vsel %vm510_vm8, %v1308_v10, %v507_v16  ;;  %v460_v26 = vsub.f32 1.0, %v459_v19  ;;  %vm464_vm11 = vweird.f32 %v1361_v54  ;;  %vm558_vm12 = vcmp.eq.f32.partialorder %v557_v13, 8.507059e+37  ;;  %vm555_vm13 = vmor %vm553_vm2, %vm554_vm9 }
 0x161   : > { %v516_v27 = vsel %vm1381_vm7, %v515_v11, %v511_v25  ;;  %v552_v29 = vadd.f32 %v1260_v48, %v551_v24  ;;  %v467_v37 = vand.u32 2147483647, %v1317_v23  ;;  %v560_v31 = vor.u32 1.1754944e-38, %v559_v17  ;;  %vm1421_vm14 = vmor %vm463_vm10, %vm464_vm11 }
 0x162   : > { %695 = vperm.xlu2 %955, %v516_v27   ;;  %v461_v10 = vmul.f32 %v1361_v54, %v460_v26  ;;  %v469_v33 = vand.u32 2147483648, %v1317_v23  ;;  %v579_v34 = vmul.f32 %v1367_v58, %v1319_v28  ;;  %1018 = vrcp.f32 %v1398_v22 }
 0x163   : > { %v556_v35 = vsel %vm555_vm13, %v1260_v48, %v552_v29  ;;  %vm1425_vm15 = vcmp.eq.f32.partialorder %v467_v37, 8.507059e+37  ;;  %v587_v15 = vand.u32 2147483647, %v1319_v28  ;;  %v1430_v40 = vpop.eup %1014  ;;  %vm583_vm0 = vweird.f32 %v1319_v28 }
 0x164   : > { %v561_v23 = vsel %vm558_vm12, %v560_v31, %v556_v35  ;;  %v462_v41 = vadd.f32 %v1361_v54, %v461_v10  ;;  %v470_v18 = vor.u32 1.1754944e-38, %v469_v33  ;;  %v580_v43 = vsub.f32 1.0, %v579_v34  ;;  %v1017_v44 = vpop.eup %1016 }
 0x165   : > { %710 = vperm.xlu1 %953, %v561_v23   ;;  %vm584_vm1 = vweird.f32 %v1367_v58  ;;  %v589_v48 = vand.u32 2147483648, %v1319_v28  ;;  %v519_v46 = vmul.f32 %v1350_v32, %v1300_v4  ;;  %vm1442_vm2 = vcmp.eq.f32.partialorder %v587_v15, 8.507059e+37 }
 0x166   : > { %v466_v47 = vsel %vm1421_vm14, %v1361_v54, %v462_v41  ;;  %v581_v50 = vmul.f32 %v1367_v58, %v580_v43  ;;  %v527_v52 = vand.u32 2147483647, %v1300_v4  ;;  %vm523_vm3 = vweird.f32 %v1300_v4  ;;  %vm585_vm5 = vmor %vm583_vm0, %vm584_vm1 }
 0x167   : > { %v471_v59 = vsel %vm1425_vm15, %v470_v18, %v466_v47  ;;  %v520_v53 = vsub.f32 1.0, %v519_v46  ;;  %v529_v21 = vand.u32 2147483648, %v1300_v4  ;;  %v590_v54 = vor.u32 1.1754944e-38, %v589_v48 }
 0x168   : > { %680 = vperm.xlu0 %954, %v471_v59   ;;  %v582_v55 = vadd.f32 %v1367_v58, %v581_v50  ;;  %vm524_vm4 = vweird.f32 %v1350_v32  ;;  %v654_v56 = vmul.f32 %v1017_v44, %v1387_v9  ;;  %v1454_v30 = vpop.eup %1018  ;;  %vm1461_vm6 = vcmp.eq.f32.partialorder %v527_v52, 8.507059e+37 }
 0x169   : > { %v521_v57 = vmul.f32 %v1350_v32, %v520_v53  ;;  %v530_v61 = vor.u32 1.1754944e-38, %v529_v21  ;;  %vm658_vm7 = vweird.f32 %v1387_v9  ;;  %v662_v2 = vand.u32 2147483647, %v1387_v9  ;;  %vm525_vm9 = vmor %vm523_vm3, %vm524_vm4 }
 0x16a   : > { %v586_v62 = vsel %vm585_vm5, %v1367_v58, %v582_v55  ;;  %v655_v63 = vsub.f32 1.0, %v654_v56  ;;  %v474_v3 = vmul.f32 %v1395_v20, %v1352_v45  ;;  %vm659_vm8 = vweird.f32 %v1017_v44 }
 0x16b   : > { %v591_v28 = vsel %vm1442_vm2, %v590_v54, %v586_v62  ;;  %v522_v49 = vadd.f32 %v1350_v32, %v521_v57  ;;  %v664_v5 = vand.u32 2147483648, %v1387_v9  ;;  %vm478_vm10 = vweird.f32 %v1352_v45  ;;  %vm660_vm12 = vmor %vm658_vm7, %vm659_vm8 }
 0x16c   : > { %720 = vperm.xlu2 %955, %v591_v28   ;;  %v656_v58 = vmul.f32 %v1017_v44, %v655_v63  ;;  %v475_v6 = vsub.f32 1.0, %v474_v3  ;;  %vm479_vm11 = vweird.f32 %v1395_v20  ;;  %v482_v11 = vand.u32 2147483647, %v1352_v45  ;;  %v1023_v28 = vld [vmem:[%s1097_s17 + $0x58] sm:$0xff] }
 0x16d   : > { %v526_v7 = vsel %vm525_vm9, %v1350_v32, %v522_v49  ;;  %v484_v12 = vand.u32 2147483648, %v1352_v45  ;;  %v594_v13 = vmul.f32 %v1430_v40, %v1375_v0  ;;  %vm663_vm13 = vcmp.eq.f32.partialorder %v662_v2, 8.507059e+37  ;;  %vm1490_vm14 = vmor %vm478_vm10, %vm479_vm11  ;;  %v1022_v2 = vld [vmem:[%s1097_s17 + $0x50] sm:$0xff]  ;;  %v1028_v32 = vld [vmem:[%s1097_s17 + $0xc0] sm:$0xff] }
 0x16e   : > { %v531_v14 = vsel %vm1461_vm6, %v530_v61, %v526_v7  ;;  %v657_v4 = vadd.f32 %v1017_v44, %v656_v58  ;;  %v476_v16 = vmul.f32 %v1395_v20, %v475_v6  ;;  %v665_v17 = vor.u32 1.1754944e-38, %v664_v5  ;;  %v1021_v61 = vld [vmem:[%s1097_s17 + $0x18] sm:$0xff]  ;;  %v1024_v58 = vld [vmem:[%s1097_s17] sm:$0xff]  ;;  %v1025_v7 = vld [vmem:[%s1097_s17 + $0x8] sm:$0xff] }
 0x16f   : > { %700 = vperm.xlu1 %953, %v531_v14   ;;  %vm1494_vm15 = vcmp.eq.f32.partialorder %v482_v11, 8.507059e+37  ;;  %v485_v19 = vor.u32 1.1754944e-38, %v484_v12  ;;  %v595_v24 = vsub.f32 1.0, %v594_v13  ;;  %vm599_vm0 = vweird.f32 %v1430_v40  ;;  %v1026_v13 = vld [vmem:[%s1097_s17 + $0xa0] sm:$0xff] }
 0x170   : > { %v661_v25 = vsel %vm660_vm12, %v1017_v44, %v657_v4  ;;  %v477_v26 = vadd.f32 %v1395_v20, %v476_v16  ;;  %v604_v9 = vand.u32 2147483648, %v1375_v0  ;;  %v602_v37 = vand.u32 2147483647, %v1375_v0  ;;  %v1027_v4 = vld [vmem:[%s1097_s17 + $0xa8] sm:$0xff] }
 0x171   : > { %v666_v27 = vsel %vm663_vm13, %v665_v17, %v661_v25  ;;  %v596_v29 = vmul.f32 %v1430_v40, %v595_v24  ;;  %v534_v31 = vmul.f32 %v1454_v30, %v1398_v22  ;;  %vm598_vm1 = vweird.f32 %v1375_v0 }
 0x172   : > { %745 = vperm.xlu0 %954, %v666_v27   ;;  %v481_v10 = vsel %vm1490_vm14, %v1395_v20, %v477_v26  ;;  %vm538_vm2 = vweird.f32 %v1398_v22  ;;  %vm539_vm3 = vweird.f32 %v1454_v30  ;;  %v542_v36 = vand.u32 2147483647, %v1398_v22  ;;  %vm600_vm4 = vmor %vm598_vm1, %vm599_vm0  ;;  %v1030_v26 = vld [vmem:[%s1097_s17 + $0x40] sm:$0xff]  ;;  %v1031_v27 = vld [vmem:[%s1097_s17 + $0x48] sm:$0xff] }
 0x173   : > { %v486_v33 = vsel %vm1494_vm15, %v485_v19, %v481_v10  ;;  %v597_v34 = vadd.f32 %v1430_v40, %v596_v29  ;;  %v535_v35 = vsub.f32 1.0, %v534_v31  ;;  %v605_v38 = vor.u32 1.1754944e-38, %v604_v9  ;;  %vm540_vm6 = vmor %vm538_vm2, %vm539_vm3  ;;  %v1029_v19 = vld [vmem:[%s1097_s17 + $0xc8] sm:$0xff]  ;;  %v1032_v31 = vld [vmem:[%s1097_s17 + $0x30] sm:$0xff] }
 0x174   : > { %685 = vperm.xlu2 %955, %v486_v33   ;;  %v544_v20 = vand.u32 2147483648, %v1398_v22  ;;  %v639_v0 = vmul.f32 %v1385_v8, %v1331_v39  ;;  %vm603_vm5 = vcmp.eq.f32.partialorder %v602_v37, 8.507059e+37  ;;  %vm543_vm7 = vcmp.eq.f32.partialorder %v542_v36, 8.507059e+37  ;;  %v1033_v33 = vld [vmem:[%s1097_s17 + $0x38] sm:$0xff]  ;;  %v1034_v36 = vld [vmem:[%s1097_s17 + $0x90] sm:$0xff] }
 0x175   : > { %v601_v15 = vsel %vm600_vm4, %v1430_v40, %v597_v34  ;;  %v536_v23 = vmul.f32 %v1454_v30, %v535_v35  ;;  %v624_v48 = vmul.f32 %v1342_v42, %v1295_v1  ;;  %vm643_vm8 = vweird.f32 %v1331_v39 }
 0x176   : > { %v606_v41 = vsel %vm603_vm5, %v605_v38, %v601_v15  ;;  %v545_v18 = vor.u32 1.1754944e-38, %v544_v20  ;;  %v640_v43 = vsub.f32 1.0, %v639_v0  ;;  %vm644_vm9 = vweird.f32 %v1385_v8  ;;  %v1035_v20 = vld [vmem:[%s1097_s17 + $0x98] sm:$0xff] }
 0x177   : > { %725 = vperm.xlu1 %953, %v606_v41   ;;  %v537_v44 = vadd.f32 %v1454_v30, %v536_v23  ;;  %v649_v40 = vand.u32 2147483648, %v1331_v39  ;;  %v647_v47 = vand.u32 2147483647, %v1331_v39  ;;  %v625_v50 = vsub.f32 1.0, %v624_v48  ;;  %vm645_vm10 = vmor %vm643_vm8, %vm644_vm9  ;;  %v1036_v23 = vld [vmem:[%s1097_s17 + $0x70] sm:$0xff]  ;;  %v1038_v48 = vld [vmem:[%s1097_s17 + $0x80] sm:$0xff] }
 0x178   : > { %v641_v46 = vmul.f32 %v1385_v8, %v640_v43  ;;  %vm628_vm11 = vweird.f32 %v1295_v1  ;;  %vm629_vm12 = vweird.f32 %v1342_v42  ;;  %v634_v55 = vand.u32 2147483648, %v1295_v1 }
 0x179   : > { %v541_v22 = vsel %vm540_vm6, %v1454_v30, %v537_v44  ;;  %v626_v59 = vmul.f32 %v1342_v42, %v625_v50  ;;  %v650_v21 = vor.u32 1.1754944e-38, %v649_v40  ;;  %vm648_vm13 = vcmp.eq.f32.partialorder %v647_v47, 8.507059e+37  ;;  %vm630_vm14 = vmor %vm628_vm11, %vm629_vm12  ;;  %v1039_v40 = vld [vmem:[%s1097_s17 + $0x88] sm:$0xff]  ;;  %v1040_v50 = vld [vmem:[%s1097_s17 + $0x20] sm:$0xff] }
 0x17a   : > { %v546_v51 = vsel %vm543_vm7, %v545_v18, %v541_v22  ;;  %v642_v52 = vadd.f32 %v1385_v8, %v641_v46  ;;  %v632_v56 = vand.u32 2147483647, %v1295_v1  ;;  %v635_v30 = vor.u32 1.1754944e-38, %v634_v55  ;;  %v1037_v18 = vld [vmem:[%s1097_s17 + $0x78] sm:$0xff] }
 0x17b   : > { %v627_v39 = vadd.f32 %v1342_v42, %v626_v59  ;;  %v1043_v55 = vld [vmem:[%s1097_s17 + $0xd8] sm:$0xff] }
 0x17c   : > { %705 = vperm.xlu2 %955, %v546_v51   ;;  %v646_v53 = vsel %vm645_vm10, %v1385_v8, %v642_v52  ;;  %vm633_vm15 = vcmp.eq.f32.partialorder %v632_v56, 8.507059e+37  ;;  %v1041_v52 = vld [vmem:[%s1097_s17 + $0x28] sm:$0xff] }
 0x17d   : > { %v651_v54 = vsel %vm648_vm13, %v650_v21, %v646_v53  ;;  %v631_v8 = vsel %vm630_vm14, %v1342_v42, %v627_v39  ;;  %v1042_v21 = vld [vmem:[%s1097_s17 + $0xd0] sm:$0xff] }
 0x17e   : > { %v636_v57 = vsel %vm633_vm15, %v635_v30, %v631_v8  ;;  %v1044_v8 = vld [vmem:[%s1097_s17 + $0x60] sm:$0xff] }
 0x17f   : > { %740 = vperm.xlu1 %953, %v651_v54  }
 0x184   : > { %735 = vperm.xlu2 %955, %v636_v57   ;;  %v1045_v57 = vld [vmem:[%s1097_s17 + $0x68] sm:$0xff] }
 0x1b2   : > { %v676_v1 = vpop.permute.xlu2 %675 }
 0x1b3   : > { %v750_v42 = vmul.f32 %v1020_v60, %v676_v1  ;;  %v751_v62 = vmul.f32 %v1021_v61, %v676_v1 }
 0x1b5   : > { %782 = vst [vmem:[%s1547_s11 + $0x10] sm:$0xff] %v750_v42  ;;  %v1046_v42 = vld [vmem:[%s1097_s17 + $0xf0] sm:$0xff] }
 0x1b6   : > { %783 = vst [vmem:[%s1547_s11 + $0x18] sm:$0xff] %v751_v62  ;;  %v1047_v62 = vld [vmem:[%s1097_s17 + $0xf8] sm:$0xff] }
 0x1bc   : > { %v696_v63 = vpop.permute.xlu2 %695 }
 0x1bd   : > { %v758_v3 = vmul.f32 %v1022_v2, %v696_v63  ;;  %v759_v49 = vmul.f32 %v1023_v28, %v696_v63 }
 0x1bf   : > { %790 = vst [vmem:[%s1547_s11 + $0x50] sm:$0xff] %v758_v3  ;;  %v671_v5 = vpop.permute.xlu1 %670  ;;  %v1048_v3 = vld [vmem:[%s1097_s17 + $0xb0] sm:$0xff] }
 0x1c0   : > { %791 = vst [vmem:[%s1547_s11 + $0x58] sm:$0xff] %v759_v49  ;;  %v748_v6 = vmul.f32 %v1024_v58, %v671_v5  ;;  %v749_v11 = vmul.f32 %v1025_v7, %v671_v5  ;;  %v1049_v49 = vld [vmem:[%s1097_s17 + $0xb8] sm:$0xff] }
 0x1c2   : > { %780 = vst [vmem:[%s1547_s11] sm:$0xff] %v748_v6  ;;  %v1050_v6 = vld [vmem:[%s1097_s17 + $0xe0] sm:$0xff] }
 0x1c3   : > { %781 = vst [vmem:[%s1547_s11 + $0x8] sm:$0xff] %v749_v11  ;;  %v1051_v11 = vld [vmem:[%s1097_s17 + $0xe8] sm:$0xff] }
 0x1c6   : > { %v721_v12 = vpop.permute.xlu2 %720 }
 0x1c7   : > { %v768_v14 = vmul.f32 %v1026_v13, %v721_v12  ;;  %v769_v16 = vmul.f32 %v1027_v4, %v721_v12  ;;  %v731_v17 = vpop.permute.xlu0 %730 }
 0x1c8   : > { %v772_v45 = vmul.f32 %v1028_v32, %v731_v17  ;;  %v773_v24 = vmul.f32 %v1029_v19, %v731_v17 }
 0x1c9   : > { %800 = vst [vmem:[%s1547_s11 + $0xa0] sm:$0xff] %v768_v14  ;;  %v691_v25 = vpop.permute.xlu1 %690 }
 0x1ca   : > { %801 = vst [vmem:[%s1547_s11 + $0xa8] sm:$0xff] %v769_v16  ;;  %v756_v9 = vmul.f32 %v1030_v26, %v691_v25  ;;  %v757_v29 = vmul.f32 %v1031_v27, %v691_v25 }
 0x1cb   : > { %804 = vst [vmem:[%s1547_s11 + $0xc0] sm:$0xff] %v772_v45 }
 0x1cc   : > { %805 = vst [vmem:[%s1547_s11 + $0xc8] sm:$0xff] %v773_v24 }
 0x1cd   : > { %788 = vst [vmem:[%s1547_s11 + $0x40] sm:$0xff] %v756_v9 }
 0x1ce   : > { %v686_v37 = vpop.permute.xlu2 %685  ;;  %789 = vst [vmem:[%s1547_s11 + $0x48] sm:$0xff] %v757_v29 }
 0x1cf   : > { %v754_v10 = vmul.f32 %v1032_v31, %v686_v37  ;;  %v755_v34 = vmul.f32 %v1033_v33, %v686_v37  ;;  %v716_v35 = vpop.permute.xlu0 %715 }
 0x1d0   : > { %v766_v38 = vmul.f32 %v1034_v36, %v716_v35  ;;  %v767_v0 = vmul.f32 %v1035_v20, %v716_v35 }
 0x1d1   : > { %786 = vst [vmem:[%s1547_s11 + $0x30] sm:$0xff] %v754_v10 }
 0x1d2   : > { %787 = vst [vmem:[%s1547_s11 + $0x38] sm:$0xff] %v755_v34 }
 0x1d3   : > { %798 = vst [vmem:[%s1547_s11 + $0x90] sm:$0xff] %v766_v38 }
 0x1d4   : > { %799 = vst [vmem:[%s1547_s11 + $0x98] sm:$0xff] %v767_v0 }
 0x1d6   : > { %v706_v15 = vpop.permute.xlu2 %705 }
 0x1d7   : > { %v762_v41 = vmul.f32 %v1036_v23, %v706_v15  ;;  %v763_v43 = vmul.f32 %v1037_v18, %v706_v15  ;;  %v711_v44 = vpop.permute.xlu1 %710 }
 0x1d8   : > { %v764_v46 = vmul.f32 %v1038_v48, %v711_v44  ;;  %v765_v22 = vmul.f32 %v1039_v40, %v711_v44 }
 0x1d9   : > { %794 = vst [vmem:[%s1547_s11 + $0x70] sm:$0xff] %v762_v41 }
 0x1da   : > { %795 = vst [vmem:[%s1547_s11 + $0x78] sm:$0xff] %v763_v43  ;;  %v681_v47 = vpop.permute.xlu0 %680 }
 0x1db   : > { %796 = vst [vmem:[%s1547_s11 + $0x80] sm:$0xff] %v764_v46  ;;  %v752_v51 = vmul.f32 %v1040_v50, %v681_v47  ;;  %v753_v59 = vmul.f32 %v1041_v52, %v681_v47 }
 0x1dc   : > { %797 = vst [vmem:[%s1547_s11 + $0x88] sm:$0xff] %v765_v22 }
 0x1dd   : > { %784 = vst [vmem:[%s1547_s11 + $0x20] sm:$0xff] %v752_v51 }
 0x1de   : > { %785 = vst [vmem:[%s1547_s11 + $0x28] sm:$0xff] %v753_v59  ;;  %v736_v53 = vpop.permute.xlu2 %735 }
 0x1df   : > { %v774_v39 = vmul.f32 %v1042_v21, %v736_v53  ;;  %v775_v54 = vmul.f32 %v1043_v55, %v736_v53 }
 0x1e1   : > { %806 = vst [vmem:[%s1547_s11 + $0xd0] sm:$0xff] %v774_v39  ;;  %v701_v56 = vpop.permute.xlu1 %700 }
 0x1e2   : > { %807 = vst [vmem:[%s1547_s11 + $0xd8] sm:$0xff] %v775_v54  ;;  %v760_v30 = vmul.f32 %v1044_v8, %v701_v56  ;;  %v761_v1 = vmul.f32 %v1045_v57, %v701_v56 }
 0x1e4   : > { %792 = vst [vmem:[%s1547_s11 + $0x60] sm:$0xff] %v760_v30  ;;  %v746_v60 = vpop.permute.xlu0 %745 }
 0x1e5   : > { %793 = vst [vmem:[%s1547_s11 + $0x68] sm:$0xff] %v761_v1  ;;  %v778_v61 = vmul.f32 %v1046_v42, %v746_v60  ;;  %v779_v63 = vmul.f32 %v1047_v62, %v746_v60 }
 0x1e7   : > { %810 = vst [vmem:[%s1547_s11 + $0xf0] sm:$0xff] %v778_v61 }
 0x1e8   : > { %811 = vst [vmem:[%s1547_s11 + $0xf8] sm:$0xff] %v779_v63 }
 0x1e9   : > { %v726_v2 = vpop.permute.xlu1 %725 }
 0x1ea   : > { %v770_v28 = vmul.f32 %v1048_v3, %v726_v2  ;;  %v771_v5 = vmul.f32 %v1049_v49, %v726_v2 }
 0x1ec   : > { %802 = vst [vmem:[%s1547_s11 + $0xb0] sm:$0xff] %v770_v28 }
 0x1ed   : > { %803 = vst [vmem:[%s1547_s11 + $0xb8] sm:$0xff] %v771_v5 }
 0x1f1   : > { %v741_v58 = vpop.permute.xlu1 %740 }
 0x1f2   : > { %v776_v7 = vmul.f32 %v1050_v6, %v741_v58  ;;  %v777_v12 = vmul.f32 %v1051_v11, %v741_v58 }
 0x1f4   : > { %808 = vst [vmem:[%s1547_s11 + $0xe0] sm:$0xff] %v776_v7 }
 0x1f5   : > { %809 = vst [vmem:[%s1547_s11 + $0xe8] sm:$0xff] %v777_v12 }
 0x1f6 PF: > { %s13_s12 = sadd.s32 1, %s1058_s12  }
 0x1f7   : > { %p10_p4 = scmp.ge.s32.totalorder %s13_s12, 4  }
 0x1f9   :  { %12 = sbr.rel (!%p10_p4) target bundleno = 1 (0x1), region = 62 }

</bundles_post_ra>
